<compile_context>
chip_gen: v5e
topology: v5e:2x2
jax: 0.10.0
libtpu: 0.0.40
codegen_flags: <defaults>
</compile_context>

<pallas_src>
import jax
import jax.numpy as jnp
import numpy as np
from jax.experimental import pallas as pl
from jax.experimental.pallas import tpu as pltpu


def _round_up(x, m):
    return ((x + m - 1) // m) * m


def ff_kernel(x_ref, w1s_ref, b_ref, w2_ref, w3_ref, o_ref):
    out_p = w2_ref.shape[0]        # padded hidden width (multiple of 128)
    out_feats = o_ref.shape[1]     # true (unpadded) output width

    # Cast activations to the MXU streaming dtype in-kernel (keeps the x DMA
    # in its original layout); every matmul accumulates in f32.
    x = x_ref[...].astype(w1s_ref.dtype)

    # Fused layer-1 + shortcut GEMM: one MXU pass with 2*out_p output lanes;
    # the split below lands exactly on a 128-lane (vreg) boundary.
    h1s = jnp.dot(x, w1s_ref[...], preferred_element_type=jnp.float32)
    h = jnp.maximum(h1s[:, :out_p] + b_ref[0:1, :], 0.0)   # layer 1 + ReLU
    sc = h1s[:, out_p:] + b_ref[1:2, :]                     # shortcut Linear

    # GINMLP layers 2 and 3 (bias / ReLU in f32 on the VPU).
    h = jnp.dot(h.astype(w2_ref.dtype), w2_ref[...],
                preferred_element_type=jnp.float32) + b_ref[2:3, :]
    h = jnp.maximum(h, 0.0)
    h = jnp.dot(h.astype(w3_ref.dtype), w3_ref[...],
                preferred_element_type=jnp.float32) + b_ref[3:4, :]

    # FF: relu(block(x)) + shortcut(x); store only the true output lanes.
    out = jnp.maximum(h, 0.0) + sc
    o_ref[...] = out[:, :out_feats].astype(o_ref.dtype)


def prepare_ff_params(params, compute_dtype=jnp.bfloat16):
    """One-time weight prep (pad / fuse / cast). Call once, reuse every step."""
    in_feats, out_feats = params["w1"].shape
    out_p = _round_up(out_feats, 128)
    f32 = jnp.float32

    def pad_cols(a, cols):
        r, c = a.shape
        return jnp.zeros((r, cols), f32).at[:, :c].set(a.astype(f32))

    def pad_sq(a):
        return jnp.zeros((out_p, out_p), f32).at[:out_feats, :out_feats].set(
            a.astype(f32))

    # Fused [w1 | ws]; zero-padded columns are exact no-ops.
    w1s = jnp.concatenate([pad_cols(params["w1"], out_p),
                           pad_cols(params["ws"], out_p)],
                          axis=1).astype(compute_dtype)       # [in, 2*out_p]
    w2 = pad_sq(params["w2"]).astype(compute_dtype)           # [out_p, out_p]
    w3 = pad_sq(params["w3"]).astype(compute_dtype)           # [out_p, out_p]
    # One f32 constant stream with all biases: rows = b1, bs, b2, b3.
    b_all = jnp.concatenate([pad_cols(params["b1"], out_p),
                             pad_cols(params["bs"], out_p),
                             pad_cols(params["b2"], out_p),
                             pad_cols(params["b3"], out_p)], axis=0)  # [4, out_p]

    return {"w1s": w1s, "b_all": b_all, "w2": w2, "w3": w3,
            "in_feats": in_feats, "out_feats": out_feats, "out_p": out_p}


def ff_forward(x, prep, *, tm=512):
    """x: [N, in_feats] float array. prep: output of prepare_ff_params."""
    N, in_feats = x.shape
    assert in_feats == prep["in_feats"]
    out_feats, out_p = prep["out_feats"], prep["out_p"]
    w1s, b_all, w2, w3 = prep["w1s"], prep["b_all"], prep["w2"], prep["w3"]

    # >= 2 row-grid steps (both v7x cores get work); 16-sublane aligned tiles.
    tm = max(16, min(tm, _round_up(pl.cdiv(N, 2), 16)))
    grid = (pl.cdiv(N, tm),)

    def const_spec(shape):   # resident constants -> single buffer
        return pl.BlockSpec(shape, lambda i: (0, 0),
                            pipeline_mode=pl.Buffered(1))

    w_bytes = sum(int(np.prod(a.shape)) * a.dtype.itemsize
                  for a in (w1s, b_all, w2, w3))
    tile_bytes = 2 * tm * (in_feats * x.dtype.itemsize + out_feats * 4)
    vmem_limit = int(min(128 << 20,
                         max(32 << 20, 2 * (w_bytes + tile_bytes) + (4 << 20))))

    flops = 2 * N * (in_feats * 2 * out_p + 2 * out_p * out_p)
    bytes_accessed = x.size * x.dtype.itemsize + w_bytes + N * out_feats * 4

    return pl.pallas_call(
        ff_kernel,
        out_shape=jax.ShapeDtypeStruct((N, out_feats), jnp.float32),
        grid_spec=pltpu.PrefetchScalarGridSpec(
            num_scalar_prefetch=0,
            grid=grid,
            in_specs=[
                pl.BlockSpec((tm, in_feats), lambda i: (i, 0)),  # x row tile
                const_spec((in_feats, 2 * out_p)),               # [w1 | ws]
                const_spec((4, out_p)),                          # b1;bs;b2;b3
                const_spec((out_p, out_p)),                      # w2
                const_spec((out_p, out_p)),                      # w3
            ],
            out_specs=pl.BlockSpec((tm, out_feats), lambda i: (i, 0)),
        ),
        compiler_params=pltpu.CompilerParams(
            dimension_semantics=("parallel",),
            vmem_limit_bytes=vmem_limit),
        cost_estimate=pl.CostEstimate(flops=flops, transcendentals=0,
                                      bytes_accessed=bytes_accessed),
    )(x, w1s, b_all, w2, w3)


def ff_reference(x, p):
    h = jnp.maximum(x @ p["w1"] + p["b1"], 0.0)
    h = jnp.maximum(h @ p["w2"] + p["b2"], 0.0)
    h = h @ p["w3"] + p["b3"]
    sc = x @ p["ws"] + p["bs"]
    return jnp.maximum(h, 0.0) + sc


def init_params(key, in_feats, out_feats):
    ks = jax.random.split(key, 8)
    s = 0.1
    return {
        "w1": s * jax.random.normal(ks[0], (in_feats, out_feats), jnp.float32),
        "b1": s * jax.random.normal(ks[1], (1, out_feats), jnp.float32),
        "w2": s * jax.random.normal(ks[2], (out_feats, out_feats), jnp.float32),
        "b2": s * jax.random.normal(ks[3], (1, out_feats), jnp.float32),
        "w3": s * jax.random.normal(ks[4], (out_feats, out_feats), jnp.float32),
        "b3": s * jax.random.normal(ks[5], (1, out_feats), jnp.float32),
        "ws": s * jax.random.normal(ks[6], (in_feats, out_feats), jnp.float32),
        "bs": s * jax.random.normal(ks[7], (1, out_feats), jnp.float32),
    }


if __name__ == "__main__":
    key = jax.random.PRNGKey(0)
    k_x, k_p = jax.random.split(key)

    N, in_feats, out_feats = 512, 48, 32
    x = jax.random.normal(k_x, (N, in_feats), jnp.float32)
    params = init_params(k_p, in_feats, out_feats)
    ref = ff_reference(x, params)

    # f32 MXU path (exact-ish; padded lanes are exact no-ops).
    prep_f32 = prepare_ff_params(params, compute_dtype=jnp.float32)
    out_f32 = jax.block_until_ready(ff_forward(x, prep_f32))
    np.testing.assert_allclose(np.asarray(out_f32), np.asarray(ref),
                               rtol=1e-5, atol=1e-5)

    # Default bf16 MXU streaming path (f32 accumulation / bias / ReLU).
    prep_bf16 = prepare_ff_params(params)   # bf16 default
    out_bf16 = jax.block_until_ready(ff_forward(x, prep_bf16))
    np.testing.assert_allclose(np.asarray(out_bf16), np.asarray(ref),
                               rtol=5e-2, atol=5e-2)

    # Ragged row count: exercises grid = cdiv(N, tm) with a partial last tile.
    N2 = 200
    out_rag = jax.block_until_ready(ff_forward(x[:N2], prep_f32))
    np.testing.assert_allclose(np.asarray(out_rag), np.asarray(ref[:N2]),
                               rtol=1e-5, atol=1e-5)

    print("KERNEL_OK")
</pallas_src>

<mosaic_0001>
module attributes {stable_mosaic.version = 11 : i64} {
  func.func @ff_kernel(%arg0: i32, %arg1: memref<256x48xf32, #tpu.memory_space<vmem>>, %arg2: memref<48x256xf32, #tpu.memory_space<vmem>>, %arg3: memref<4x128xf32, #tpu.memory_space<vmem>>, %arg4: memref<128x128xf32, #tpu.memory_space<vmem>>, %arg5: memref<128x128xf32, #tpu.memory_space<vmem>>, %arg6: memref<256x32xf32, #tpu.memory_space<vmem>>) attributes {dimension_semantics = [#tpu.dimension_semantics<parallel>], iteration_bounds = array<i64: 2>, scalar_prefetch = 0 : i64, scratch_operands = 0 : i64, tpu.core_type = #tpu.core_type<tc>, window_params = [{transform_indices = @transform_0, window_bounds = array<i64: 256, 48>}, {pipeline_mode = #tpu.pipeline_mode<synchronous>, transform_indices = @transform_1, window_bounds = array<i64: 48, 256>}, {pipeline_mode = #tpu.pipeline_mode<synchronous>, transform_indices = @transform_2, window_bounds = array<i64: 4, 128>}, {pipeline_mode = #tpu.pipeline_mode<synchronous>, transform_indices = @transform_3, window_bounds = array<i64: 128, 128>}, {pipeline_mode = #tpu.pipeline_mode<synchronous>, transform_indices = @transform_4, window_bounds = array<i64: 128, 128>}, {transform_indices = @transform_5, window_bounds = array<i64: 256, 32>}]} {
    %c0 = arith.constant 0 : index
    %c0_0 = arith.constant 0 : index
    %0 = vector.load %arg1[%c0, %c0_0] : memref<256x48xf32, #tpu.memory_space<vmem>>, vector<256x48xf32>
    %c0_1 = arith.constant 0 : index
    %c0_2 = arith.constant 0 : index
    %1 = vector.load %arg2[%c0_1, %c0_2] : memref<48x256xf32, #tpu.memory_space<vmem>>, vector<48x256xf32>
    %cst = arith.constant dense<0.000000e+00> : vector<256x256xf32>
    %2 = tpu.matmul %0, %1, %cst {dimension_numbers = #tpu.dot_dimension_numbers<[1], [0], [0], [1], [0, 0, 1, 1], [], []>} : vector<256x48xf32>, vector<48x256xf32>, vector<256x256xf32> -> vector<256x256xf32>
    %3 = vector.extract_strided_slice %2 {offsets = [0, 0], sizes = [256, 128], strides = [1, 1]} : vector<256x256xf32> to vector<256x128xf32>
    %c0_3 = arith.constant 0 : index
    %c0_4 = arith.constant 0 : index
    %4 = vector.load %arg3[%c0_3, %c0_4] : memref<4x128xf32, #tpu.memory_space<vmem>>, vector<1x128xf32>
    %5 = vector.broadcast %4 : vector<1x128xf32> to vector<256x128xf32>
    %6 = arith.addf %3, %5 : vector<256x128xf32>
    %cst_5 = arith.constant 0.000000e+00 : f32
    %7 = vector.broadcast %cst_5 : f32 to vector<256x128xf32>
    %8 = arith.maximumf %6, %7 : vector<256x128xf32>
    %9 = vector.extract_strided_slice %2 {offsets = [0, 128], sizes = [256, 128], strides = [1, 1]} : vector<256x256xf32> to vector<256x128xf32>
    %c1 = arith.constant 1 : index
    %c0_6 = arith.constant 0 : index
    %10 = vector.load %arg3[%c1, %c0_6] : memref<4x128xf32, #tpu.memory_space<vmem>>, vector<1x128xf32>
    %11 = vector.broadcast %10 : vector<1x128xf32> to vector<256x128xf32>
    %12 = arith.addf %9, %11 : vector<256x128xf32>
    %c0_7 = arith.constant 0 : index
    %c0_8 = arith.constant 0 : index
    %13 = vector.load %arg4[%c0_7, %c0_8] : memref<128x128xf32, #tpu.memory_space<vmem>>, vector<128x128xf32>
    %cst_9 = arith.constant dense<0.000000e+00> : vector<256x128xf32>
    %14 = tpu.matmul %8, %13, %cst_9 {dimension_numbers = #tpu.dot_dimension_numbers<[1], [0], [0], [1], [0, 0, 1, 1], [], []>} : vector<256x128xf32>, vector<128x128xf32>, vector<256x128xf32> -> vector<256x128xf32>
    %c2 = arith.constant 2 : index
    %c0_10 = arith.constant 0 : index
    %15 = vector.load %arg3[%c2, %c0_10] : memref<4x128xf32, #tpu.memory_space<vmem>>, vector<1x128xf32>
    %16 = vector.broadcast %15 : vector<1x128xf32> to vector<256x128xf32>
    %17 = arith.addf %14, %16 : vector<256x128xf32>
    %cst_11 = arith.constant 0.000000e+00 : f32
    %18 = vector.broadcast %cst_11 : f32 to vector<256x128xf32>
    %19 = arith.maximumf %17, %18 : vector<256x128xf32>
    %c0_12 = arith.constant 0 : index
    %c0_13 = arith.constant 0 : index
    %20 = vector.load %arg5[%c0_12, %c0_13] : memref<128x128xf32, #tpu.memory_space<vmem>>, vector<128x128xf32>
    %cst_14 = arith.constant dense<0.000000e+00> : vector<256x128xf32>
    %21 = tpu.matmul %19, %20, %cst_14 {dimension_numbers = #tpu.dot_dimension_numbers<[1], [0], [0], [1], [0, 0, 1, 1], [], []>} : vector<256x128xf32>, vector<128x128xf32>, vector<256x128xf32> -> vector<256x128xf32>
    %c3 = arith.constant 3 : index
    %c0_15 = arith.constant 0 : index
    %22 = vector.load %arg3[%c3, %c0_15] : memref<4x128xf32, #tpu.memory_space<vmem>>, vector<1x128xf32>
    %23 = vector.broadcast %22 : vector<1x128xf32> to vector<256x128xf32>
    %24 = arith.addf %21, %23 : vector<256x128xf32>
    %cst_16 = arith.constant 0.000000e+00 : f32
    %25 = vector.broadcast %cst_16 : f32 to vector<256x128xf32>
    %26 = arith.maximumf %24, %25 : vector<256x128xf32>
    %27 = arith.addf %26, %12 : vector<256x128xf32>
    %28 = vector.extract_strided_slice %27 {offsets = [0, 0], sizes = [256, 32], strides = [1, 1]} : vector<256x128xf32> to vector<256x32xf32>
    %c0_17 = arith.constant 0 : index
    %c0_18 = arith.constant 0 : index
    %29 = vector.load %arg6[%c0_17, %c0_18] : memref<256x32xf32, #tpu.memory_space<vmem>>, vector<256x32xf32>
    tpu.vector_store %arg6[%c0_17, %c0_18], %28 {strides = array<i32>} : memref<256x32xf32, #tpu.memory_space<vmem>>, vector<256x32xf32>,
    return
  }
  func.func @transform_0(%arg0: i32) -> (i32, i32) {
    %c0_i32 = arith.constant 0 : i32
    %c0_i32_0 = arith.constant 0 : i32
    return %arg0, %c0_i32 : i32, i32
  }
  func.func @transform_1(%arg0: i32) -> (i32, i32) {
    %c0_i32 = arith.constant 0 : i32
    %c0_i32_0 = arith.constant 0 : i32
    %c0_i32_1 = arith.constant 0 : i32
    return %c0_i32, %c0_i32_0 : i32, i32
  }
  func.func @transform_2(%arg0: i32) -> (i32, i32) {
    %c0_i32 = arith.constant 0 : i32
    %c0_i32_0 = arith.constant 0 : i32
    %c0_i32_1 = arith.constant 0 : i32
    return %c0_i32, %c0_i32_0 : i32, i32
  }
  func.func @transform_3(%arg0: i32) -> (i32, i32) {
    %c0_i32 = arith.constant 0 : i32
    %c0_i32_0 = arith.constant 0 : i32
    %c0_i32_1 = arith.constant 0 : i32
    return %c0_i32, %c0_i32_0 : i32, i32
  }
  func.func @transform_4(%arg0: i32) -> (i32, i32) {
    %c0_i32 = arith.constant 0 : i32
    %c0_i32_0 = arith.constant 0 : i32
    %c0_i32_1 = arith.constant 0 : i32
    return %c0_i32, %c0_i32_0 : i32, i32
  }
  func.func @transform_5(%arg0: i32) -> (i32, i32) {
    %c0_i32 = arith.constant 0 : i32
    %c0_i32_0 = arith.constant 0 : i32
    return %arg0, %c0_i32 : i32, i32
  }
}

</mosaic_0001>

<bundles_post_ra>
// kernel: tpu_custom_call.1
= control target key start
LH: loop header
LB: loop body
LE: loop exit
PB: predicated region body
PF: predicated region fallthrough
CT: control target
= control target key end

     0   :  { %s1299_s18 = smov 0   ;;  %s1994_s0 = inlined_call_operand.vmem [shape: f32[512,48], index: 0, kind: input, shape index: {}]   ;;  %s1995_s1 = inlined_call_operand.vmem [shape: f32[48,256], index: 1, kind: input, shape index: {}]   ;;  %s1996_s2 = inlined_call_operand.vmem [shape: f32[4,128], index: 2, kind: input, shape index: {}]   ;;  %s1997_s3 = inlined_call_operand.vmem [shape: f32[128,128], index: 3, kind: input, shape index: {}]   ;;  %s1998_s4 = inlined_call_operand.vmem [shape: f32[128,128], index: 4, kind: input, shape index: {}]   ;;  %s1999_s5 = inlined_call_operand.vmem [shape: f32[512,32], index: 5, kind: output, shape index: {}]  }
   0x1 LB: > { %s1142_s19 = sadd.s32 4294967295, %s1267_s18   ;;  %p1146_p0 = scmp.ge.s32.totalorder %s1267_s18, 1  ;;  %s1267_s18 = sphi %s1299_s18, %s15_s18  }
   0x2   : > { %p188_p1 = scmp.lt.s32.totalorder %s1267_s18, 3 }
   0x4   : > { %p189_p2 = pnand %p1146_p0, %p188_p1 }
   0x5   : > { %s1147_s24 = sshll.u32 (!%p189_p2), %s1142_s19, 5 }
   0x6   : > { %192 = sbr.rel (%p189_p2) target bundleno = 676 (0x2a4), region = 40  ;;  %p217_p3 = scmp.lt.s32.totalorder (!%p189_p2), %s1147_s24, 63 }
   0xb   : > { %v270_v0 = vld [vmem:[%s1995_s1 + $0x50] sm:$0xff]  ;;  %v268_v1 = vld [vmem:[%s1995_s1 + $0x40] sm:$0xff]  ;;  %s2001_s24 = smov (!%p217_p3, %s1147_s24), 63  ;;  %vm272_vm0 = vcmask 392192   ;;  %v710_v16 = vld [vmem:[%s1997_s3 + $0x78] sm:$0xff]  ;;  %vm1053_vm1 = vcmask 261120  }
   0xc   : > { %379 = vmatpush.msra.mxu0 %v270_v0  ;;  %v266_v2 = vld [vmem:[%s1995_s1 + $0x30] sm:$0xff]  ;;  %v264_v3 = vld [vmem:[%s1995_s1 + $0x20] sm:$0xff]  ;;  %s1148_s29 = sshll.u32 %s2001_s24, 3  ;;  %1217 = vmatpush.msra.mxu2 %v710_v16  ;;  %v708_v18 = vld [vmem:[%s1997_s3 + $0x68] sm:$0xff] }
   0xd   : > { %v262_v4 = vld [vmem:[%s1995_s1 + $0x10] sm:$0xff]  ;;  %s1330_s9 = scalar_lea.vmem %s1994_s0, %s1148_s29  ;;  %v260_v5 = vld [vmem:[%s1995_s1] sm:$0xff]  ;;  %v706_v21 = vld [vmem:[%s1997_s3 + $0x58] sm:$0xff]  ;;  %s1799_s13 = scalar_lea.vmem %s1999_s5, %s1148_s29 }
   0xe   : > { %380 = vmatpush.msra.mxu0 %v268_v1  ;;  %v1336_v6 = vld [vmem:[%s1330_s9] sm:$0xff]  ;;  %v1341_v7 = vld [vmem:[%s1330_s9 + $0x8] sm:$0xff]  ;;  %v1346_v8 = vld [vmem:[%s1330_s9 + $0x10] sm:$0xff] }
   0xf   : > { %v1351_v9 = vld [vmem:[%s1330_s9 + $0x18] sm:$0xff]  ;;  %v1356_v10 = vld [vmem:[%s1330_s9 + $0x20] sm:$0xff]  ;;  %v1361_v11 = vld [vmem:[%s1330_s9 + $0x28] sm:$0xff] }
  0x10   : > { %381 = vmatpush.msra.mxu0 %v266_v2  ;;  %v1366_v12 = vld [vmem:[%s1330_s9 + $0x30] sm:$0xff]  ;;  %v1371_v13 = vld [vmem:[%s1330_s9 + $0x38] sm:$0xff]  ;;  %v1376_v14 = vld [vmem:[%s1330_s9 + $0x40] sm:$0xff] }
  0x11   : > { %v1381_v15 = vld [vmem:[%s1330_s9 + $0x48] sm:$0xff]  ;;  %v709_v17 = vld [vmem:[%s1997_s3 + $0x70] sm:$0xff]  ;;  %v707_v20 = vld [vmem:[%s1997_s3 + $0x60] sm:$0xff] }
  0x12   : > { %382 = vmatpush.msra.mxu0 %v264_v3  ;;  %1218 = vmatpush.msra.mxu2 %v709_v17  ;;  %v1395_v19 = vld [vmem:[%s1330_s9 + $0x50] sm:$0xff]  ;;  %v271_v22 = vld [vmem:[%s1995_s1 + $0x58] sm:$0xff]  ;;  %v704_v24 = vld [vmem:[%s1997_s3 + $0x48] sm:$0xff] }
  0x13   : > { %v705_v23 = vld [vmem:[%s1997_s3 + $0x50] sm:$0xff]  ;;  %492 = vmatpush.msra.mxu1 %v271_v22  ;;  %v1415_v25 = vld [vmem:[%s1330_s9 + $0x58] sm:$0xff]  ;;  %v269_v26 = vld [vmem:[%s1995_s1 + $0x48] sm:$0xff] }
  0x14   : > { %383 = vmatpush.msra.mxu0 %v262_v4  ;;  %1219 = vmatpush.msra.mxu2 %v708_v18  ;;  %v703_v27 = vld [vmem:[%s1997_s3 + $0x40] sm:$0xff]  ;;  %v267_v28 = vld [vmem:[%s1995_s1 + $0x38] sm:$0xff]  ;;  %v265_v30 = vld [vmem:[%s1995_s1 + $0x28] sm:$0xff] }
  0x15   : > { %493 = vmatpush.msra.mxu1 %v269_v26  ;;  %v702_v29 = vld [vmem:[%s1997_s3 + $0x38] sm:$0xff]  ;;  %v701_v31 = vld [vmem:[%s1997_s3 + $0x30] sm:$0xff]  ;;  %v1438_v32 = vld [vmem:[%s1330_s9 + $0x60] sm:$0xff] }
  0x16   : > { %384 = vmatpush.msra.mxu0 %v260_v5  ;;  %1220 = vmatpush.msra.mxu2 %v707_v20  ;;  %v263_v33 = vld [vmem:[%s1995_s1 + $0x18] sm:$0xff]  ;;  %v700_v34 = vld [vmem:[%s1997_s3 + $0x28] sm:$0xff]  ;;  %v699_v36 = vld [vmem:[%s1997_s3 + $0x20] sm:$0xff] }
  0x17   : > { %1151 = vmatmul.msk.f32.vlgmr.msra.gmra.mxu0 %vm272_vm0, %v1336_v6  ;;  %494 = vmatpush.msra.mxu1 %v267_v28  ;;  %v261_v35 = vld [vmem:[%s1995_s1 + $0x8] sm:$0xff]  ;;  %v698_v37 = vld [vmem:[%s1997_s3 + $0x18] sm:$0xff]  ;;  %v697_v38 = vld [vmem:[%s1997_s3 + $0x10] sm:$0xff] }
  0x18   : > { %713 = vmatpush.msrb.mxu0 %v710_v16  ;;  %1221 = vmatpush.msra.mxu2 %v706_v21  ;;  %v1463_v39 = vld [vmem:[%s1330_s9 + $0x68] sm:$0xff]  ;;  %v695_v41 = vld [vmem:[%s1997_s3] sm:$0xff]  ;;  %v1476_v42 = vld [vmem:[%s1330_s9 + $0x70] sm:$0xff] }
  0x19   : > { %495 = vmatpush.msra.mxu1 %v265_v30  ;;  %v696_v40 = vld [vmem:[%s1997_s3 + $0x8] sm:$0xff]  ;;  %v1483_v43 = vld [vmem:[%s1330_s9 + $0x78] sm:$0xff]  ;;  %v1492_v45 = vld [vmem:[%s1330_s9 + $0x80] sm:$0xff] }
  0x1a   : > { %714 = vmatpush.msrb.mxu0 %v709_v17  ;;  %1222 = vmatpush.msra.mxu2 %v705_v23  ;;  %v1501_v46 = vld [vmem:[%s1996_s2] ss:$0 sm:$0xff]  ;;  %v1504_v48 = vld [vmem:[%s1330_s9 + $0x88] sm:$0xff]  ;;  %v1512_v52 = vld [vmem:[%s1330_s9 + $0x90] sm:$0xff] }
  0x1b   : > { %496 = vmatpush.msra.mxu1 %v263_v33  ;;  %v1520_v56 = vld [vmem:[%s1330_s9 + $0x98] sm:$0xff]  ;;  %v1528_v60 = vld [vmem:[%s1330_s9 + $0xa0] sm:$0xff]  ;;  %v1536_v0 = vld [vmem:[%s1330_s9 + $0xa8] sm:$0xff] }
  0x1c   : > { %715 = vmatpush.msrb.mxu0 %v708_v18  ;;  %1223 = vmatpush.msra.mxu2 %v704_v24  ;;  %v1544_v4 = vld [vmem:[%s1330_s9 + $0xb0] sm:$0xff]  ;;  %v1568_v16 = vld [vmem:[%s1330_s9 + $0xc8] sm:$0xff]  ;;  %v1590_v26 = vld [vmem:[%s1330_s9 + $0xd8] sm:$0xff] }
  0x1d   : > { %497 = vmatpush.msra.mxu1 %v261_v35  ;;  %v871_v28 = vld [vmem:[%s1998_s4 + $0x68] sm:$0xff]  ;;  %v870_v30 = vld [vmem:[%s1998_s4 + $0x60] sm:$0xff] }
  0x1e   : > { %716 = vmatpush.msrb.mxu0 %v707_v20  ;;  %1224 = vmatpush.msra.mxu2 %v703_v27  ;;  %v1576_v20 = vld [vmem:[%s1330_s9 + $0xd0] sm:$0xff] }
  0x1f   : > { %1152 = vmatmul.msk.f32.gmra.mxu0 %vm272_vm0, %v1341_v7  ;;  %1183 = vmatmul.msk.f32.vlgmr.msra.gmra.mxu1 %vm272_vm0, %v1336_v6 }
  0x20   : > { %717 = vmatpush.msrb.mxu0 %v706_v21  ;;  %1225 = vmatpush.msra.mxu2 %v702_v29 }
  0x22   : > { %718 = vmatpush.msrb.mxu0 %v705_v23  ;;  %1226 = vmatpush.msra.mxu2 %v701_v31  ;;  %v873_v23 = vld [vmem:[%s1998_s4 + $0x78] sm:$0xff] }
  0x23   : > { %1233 = vmatpush.msra.mxu3 %v873_v23  ;;  %876 = vmatpush.msrb.mxu1 %v873_v23 }
  0x24   : > { %719 = vmatpush.msrb.mxu0 %v704_v24  ;;  %1227 = vmatpush.msra.mxu2 %v700_v34  ;;  %v872_v24 = vld [vmem:[%s1998_s4 + $0x70] sm:$0xff] }
  0x25   : > { %1234 = vmatpush.msra.mxu3 %v872_v24  ;;  %877 = vmatpush.msrb.mxu1 %v872_v24 }
  0x26   : > { %720 = vmatpush.msrb.mxu0 %v703_v27  ;;  %1228 = vmatpush.msra.mxu2 %v699_v36 }
  0x27   : > { %1153 = vmatmul.msk.f32.gmra.mxu0 %vm272_vm0, %v1346_v8  ;;  %1184 = vmatmul.msk.f32.gmra.mxu1 %vm272_vm0, %v1341_v7 }
  0x28   : > { %721 = vmatpush.msrb.mxu0 %v702_v29  ;;  %1229 = vmatpush.msra.mxu2 %v698_v37 }
  0x29   : > { %1235 = vmatpush.msra.mxu3 %v871_v28  ;;  %878 = vmatpush.msrb.mxu1 %v871_v28 }
  0x2a   : > { %722 = vmatpush.msrb.mxu0 %v701_v31  ;;  %1230 = vmatpush.msra.mxu2 %v697_v38  ;;  %v869_v31 = vld [vmem:[%s1998_s4 + $0x58] sm:$0xff] }
  0x2b   : > { %1236 = vmatpush.msra.mxu3 %v870_v30  ;;  %879 = vmatpush.msrb.mxu1 %v870_v30 }
  0x2c   : > { %723 = vmatpush.msrb.mxu0 %v700_v34  ;;  %1231 = vmatpush.msra.mxu2 %v696_v40  ;;  %v1610_v34 = vld [vmem:[%s1330_s9 + $0xe0] sm:$0xff] }
  0x2d   : > { %1237 = vmatpush.msra.mxu3 %v869_v31  ;;  %880 = vmatpush.msrb.mxu1 %v869_v31 }
  0x2e   : > { %724 = vmatpush.msrb.mxu0 %v699_v36  ;;  %1232 = vmatpush.msra.mxu2 %v695_v41  ;;  %v867_v36 = vld [vmem:[%s1998_s4 + $0x48] sm:$0xff] }
  0x2f   : > { %1154 = vmatmul.msk.f32.gmra.mxu0 %vm272_vm0, %v1351_v9  ;;  %1185 = vmatmul.msk.f32.gmra.mxu1 %vm272_vm0, %v1346_v8  ;;  %v1552_v8 = vld [vmem:[%s1330_s9 + $0xb8] sm:$0xff] }
  0x30   : > { %725 = vmatpush.msrb.mxu0 %v698_v37 }
  0x32   : > { %726 = vmatpush.msrb.mxu0 %v697_v38 }
  0x34   : > { %727 = vmatpush.msrb.mxu0 %v696_v40  ;;  %v865_v40 = vld [vmem:[%s1998_s4 + $0x38] sm:$0xff] }
  0x36   : > { %728 = vmatpush.msrb.mxu0 %v695_v41  ;;  %v864_v41 = vld [vmem:[%s1998_s4 + $0x30] sm:$0xff] }
  0x37   : > { %1155 = vmatmul.msk.f32.gmra.mxu0 %vm272_vm0, %v1356_v10  ;;  %1186 = vmatmul.msk.f32.gmra.mxu1 %vm272_vm0, %v1351_v9 }
  0x3f   : > { %1156 = vmatmul.msk.f32.gmra.mxu0 %vm272_vm0, %v1361_v11  ;;  %1187 = vmatmul.msk.f32.gmra.mxu1 %vm272_vm0, %v1356_v10 }
  0x47   : > { %1157 = vmatmul.msk.f32.gmra.mxu0 %vm272_vm0, %v1366_v12  ;;  %1188 = vmatmul.msk.f32.gmra.mxu1 %vm272_vm0, %v1361_v11 }
  0x4f   : > { %1158 = vmatmul.msk.f32.gmra.mxu0 %vm272_vm0, %v1371_v13  ;;  %1189 = vmatmul.msk.f32.gmra.mxu1 %vm272_vm0, %v1366_v12  ;;  %v1560_v12 = vld [vmem:[%s1330_s9 + $0xc0] sm:$0xff] }
  0x57   : > { %1159 = vmatmul.msk.f32.gmra.mxu0 %vm272_vm0, %v1376_v14  ;;  %1190 = vmatmul.msk.f32.gmra.mxu1 %vm272_vm0, %v1371_v13 }
  0x5f   : > { %1160 = vmatmul.msk.f32.gmra.mxu0 %vm272_vm0, %v1381_v15  ;;  %1191 = vmatmul.msk.f32.gmra.mxu1 %vm272_vm0, %v1376_v14 }
  0x67   : > { %1161 = vmatmul.msk.f32.gmra.mxu0 %vm272_vm0, %v1395_v19  ;;  %1192 = vmatmul.msk.f32.gmra.mxu1 %vm272_vm0, %v1381_v15 }
  0x6f   : > { %1162 = vmatmul.msk.f32.gmra.mxu0 %vm272_vm0, %v1415_v25  ;;  %1193 = vmatmul.msk.f32.gmra.mxu1 %vm272_vm0, %v1395_v19 }
  0x77   : > { %1163 = vmatmul.msk.f32.gmra.mxu0 %vm272_vm0, %v1438_v32  ;;  %1194 = vmatmul.msk.f32.gmra.mxu1 %vm272_vm0, %v1415_v25 }
  0x7f   : > { %1164 = vmatmul.msk.f32.gmra.mxu0 %vm272_vm0, %v1463_v39  ;;  %1195 = vmatmul.msk.f32.gmra.mxu1 %vm272_vm0, %v1438_v32  ;;  %v868_v32 = vld [vmem:[%s1998_s4 + $0x50] sm:$0xff] }
  0x80   : > { %1238 = vmatpush.msra.mxu3 %v868_v32  ;;  %881 = vmatpush.msrb.mxu1 %v868_v32 }
  0x82   : > { %1239 = vmatpush.msra.mxu3 %v867_v36  ;;  %882 = vmatpush.msrb.mxu1 %v867_v36 }
  0x87   : > { %1165 = vmatmul.msk.f32.gmra.mxu0 %vm272_vm0, %v1476_v42  ;;  %1196 = vmatmul.msk.f32.gmra.mxu1 %vm272_vm0, %v1463_v39  ;;  %v866_v39 = vld [vmem:[%s1998_s4 + $0x40] sm:$0xff] }
  0x88   : > { %1240 = vmatpush.msra.mxu3 %v866_v39  ;;  %883 = vmatpush.msrb.mxu1 %v866_v39 }
  0x8a   : > { %1241 = vmatpush.msra.mxu3 %v865_v40  ;;  %884 = vmatpush.msrb.mxu1 %v865_v40 }
  0x8c   : > { %1242 = vmatpush.msra.mxu3 %v864_v41  ;;  %885 = vmatpush.msrb.mxu1 %v864_v41 }
  0x8f   : > { %1166 = vmatmul.msk.f32.gmra.mxu0 %vm272_vm0, %v1483_v43  ;;  %1197 = vmatmul.msk.f32.gmra.mxu1 %vm272_vm0, %v1476_v42 }
  0x94   : > { %v1489_v44 = vpop.f32.mrf.mxu0 }
  0x97   : > { %1167 = vmatmul.msk.f32.gmra.mxu0 %vm272_vm0, %v1492_v45  ;;  %1198 = vmatmul.msk.f32.gmra.mxu1 %vm272_vm0, %v1483_v43  ;;  %v1632_v43 = vld [vmem:[%s1330_s9 + $0xe8] sm:$0xff] }
  0x9c   : > { %v389_v47 = vpop.f32.mrf.mxu0  ;;  %v1616_v37 = vpop.f32.mrf.mxu1 }
  0x9d   : > { %v598_v49 = vadd.f32 %v1501_v46, %v389_v47 }
  0x9f   : > { %1168 = vmatmul.msk.f32.gmra.mxu0 %vm272_vm0, %v1504_v48  ;;  %v630_v50 = vmax.f32 %v598_v49, 0.0  ;;  %1199 = vmatmul.msk.f32.gmra.mxu1 %vm272_vm0, %v1492_v45  ;;  %v863_v45 = vld [vmem:[%s1998_s4 + $0x28] sm:$0xff] }
  0xa0   : > { %1243 = vmatpush.msra.mxu3 %v863_v45  ;;  %886 = vmatpush.msrb.mxu1 %v863_v45 }
  0xa1   : > { %732 = vmatmul.f32.vlgmr.msra.gmra.mxu2 %v630_v50 }
  0xa4   : > { %v392_v51 = vpop.f32.mrf.mxu0  ;;  %v1638_v49 = vpop.f32.mrf.mxu1 }
  0xa5   : > { %v599_v53 = vadd.f32 %v1501_v46, %v392_v51  ;;  %v862_v51 = vld [vmem:[%s1998_s4 + $0x20] sm:$0xff] }
  0xa6   : > { %1244 = vmatpush.msra.mxu3 %v862_v51  ;;  %887 = vmatpush.msrb.mxu1 %v862_v51 }
  0xa7   : > { %1169 = vmatmul.msk.f32.gmra.mxu0 %vm272_vm0, %v1512_v52  ;;  %v631_v54 = vmax.f32 %v599_v53, 0.0  ;;  %1200 = vmatmul.msk.f32.gmra.mxu1 %vm272_vm0, %v1504_v48  ;;  %v861_v53 = vld [vmem:[%s1998_s4 + $0x18] sm:$0xff]  ;;  %v859_v48 = vld [vmem:[%s1998_s4 + $0x8] sm:$0xff] }
  0xa8   : > { %1245 = vmatpush.msra.mxu3 %v861_v53  ;;  %888 = vmatpush.msrb.mxu1 %v861_v53 }
  0xa9   : > { %735 = vmatmul.f32.gmra.mxu2 %v631_v54  ;;  %v860_v54 = vld [vmem:[%s1998_s4 + $0x10] sm:$0xff] }
  0xaa   : > { %1246 = vmatpush.msra.mxu3 %v860_v54  ;;  %889 = vmatpush.msrb.mxu1 %v860_v54 }
  0xac   : > { %v395_v55 = vpop.f32.mrf.mxu0  ;;  %1247 = vmatpush.msra.mxu3 %v859_v48  ;;  %890 = vmatpush.msrb.mxu1 %v859_v48 }
  0xad   : > { %v600_v57 = vadd.f32 %v1501_v46, %v395_v55 }
  0xaf   : > { %1170 = vmatmul.msk.f32.gmra.mxu0 %vm272_vm0, %v1520_v56  ;;  %v632_v58 = vmax.f32 %v600_v57, 0.0  ;;  %v1654_v57 = vld [vmem:[%s1330_s9 + $0xf0] sm:$0xff]  ;;  %1201 = vmatmul.msk.f32.gmra.mxu1 %vm272_vm0, %v1512_v52 }
  0xb1   : > { %738 = vmatmul.f32.gmra.mxu2 %v632_v58 }
  0xb4   : > { %v398_v59 = vpop.f32.mrf.mxu0 }
  0xb5   : > { %v601_v61 = vadd.f32 %v1501_v46, %v398_v59  ;;  %v1660_v59 = vpop.f32.mrf.mxu1 }
  0xb7   : > { %1171 = vmatmul.msk.f32.gmra.mxu0 %vm272_vm0, %v1528_v60  ;;  %v633_v62 = vmax.f32 %v601_v61, 0.0  ;;  %1202 = vmatmul.msk.f32.gmra.mxu1 %vm272_vm0, %v1520_v56  ;;  %v1692_v56 = vld [vmem:[%s1996_s2 + $0x2] ss:$0 sm:$0xff] }
  0xb9   : > { %741 = vmatmul.f32.gmra.mxu2 %v633_v62  ;;  %v858_v62 = vld [vmem:[%s1998_s4] sm:$0xff] }
  0xba   : > { %1248 = vmatpush.msra.mxu3 %v858_v62  ;;  %891 = vmatpush.msrb.mxu1 %v858_v62 }
  0xbc   : > { %v401_v63 = vpop.f32.mrf.mxu0 }
  0xbd   : > { %v602_v1 = vadd.f32 %v1501_v46, %v401_v63 }
  0xbf   : > { %1172 = vmatmul.msk.f32.gmra.mxu0 %vm272_vm0, %v1536_v0  ;;  %v634_v2 = vmax.f32 %v602_v1, 0.0  ;;  %v1670_v1 = vld [vmem:[%s1330_s9 + $0xf8] sm:$0xff]  ;;  %1203 = vmatmul.msk.f32.gmra.mxu1 %vm272_vm0, %v1528_v60 }
  0xc1   : > { %744 = vmatmul.f32.gmra.mxu2 %v634_v2 }
  0xc4   : > { %v404_v3 = vpop.f32.mrf.mxu0 }
  0xc5   : > { %v603_v5 = vadd.f32 %v1501_v46, %v404_v3  ;;  %v1673_v3 = vpop.f32.mrf.mxu1 }
  0xc7   : > { %1173 = vmatmul.msk.f32.gmra.mxu0 %vm272_vm0, %v1544_v4  ;;  %v635_v6 = vmax.f32 %v603_v5, 0.0  ;;  %1204 = vmatmul.msk.f32.gmra.mxu1 %vm272_vm0, %v1536_v0 }
  0xc9   : > { %747 = vmatmul.f32.gmra.mxu2 %v635_v6  ;;  %v597_v6 = vadd.f32 %v1501_v46, %v1489_v44 }
  0xcb   : > { %v629_v52 = vmax.f32 %v597_v6, 0.0 }
  0xcc   : > { %v407_v7 = vpop.f32.mrf.mxu0 }
  0xcd   : > { %v604_v9 = vadd.f32 %v1501_v46, %v407_v7 }
  0xcf   : > { %1174 = vmatmul.msk.f32.gmra.mxu0 %vm272_vm0, %v1552_v8  ;;  %v636_v10 = vmax.f32 %v604_v9, 0.0  ;;  %1205 = vmatmul.msk.f32.gmra.mxu1 %vm272_vm0, %v1544_v4 }
  0xd1   : > { %750 = vmatmul.f32.gmra.mxu2 %v636_v10  ;;  %v1682_v10 = vpop.f32.mrf.mxu1 }
  0xd4   : > { %v410_v11 = vpop.f32.mrf.mxu0 }
  0xd5   : > { %v605_v13 = vadd.f32 %v1501_v46, %v410_v11 }
  0xd7   : > { %1175 = vmatmul.msk.f32.gmra.mxu0 %vm272_vm0, %v1560_v12  ;;  %v637_v14 = vmax.f32 %v605_v13, 0.0  ;;  %1206 = vmatmul.msk.f32.gmra.mxu1 %vm272_vm0, %v1552_v8 }
  0xd9   : > { %753 = vmatmul.f32.gmra.mxu2 %v637_v14  ;;  %v1687_v44 = vpop.f32.mrf.mxu1 }
  0xdc   : > { %v413_v15 = vpop.f32.mrf.mxu0 }
  0xdd   : > { %v606_v17 = vadd.f32 %v1501_v46, %v413_v15 }
  0xdf   : > { %v638_v18 = vmax.f32 %v606_v17, 0.0  ;;  %1176 = vmatmul.msk.f32.gmra.mxu0 %vm272_vm0, %v1568_v16  ;;  %1207 = vmatmul.msk.f32.gmra.mxu1 %vm272_vm0, %v1560_v12 }
  0xe1   : > { %756 = vmatmul.f32.gmra.mxu2 %v638_v18 }
  0xe4   : > { %v416_v19 = vpop.f32.mrf.mxu0 }
  0xe5   : > { %v607_v21 = vadd.f32 %v1501_v46, %v416_v19 }
  0xe7   : > { %v639_v22 = vmax.f32 %v607_v21, 0.0  ;;  %1177 = vmatmul.msk.f32.gmra.mxu0 %vm272_vm0, %v1576_v20  ;;  %v1698_v21 = vpop.f32.mrf.mxu1  ;;  %1208 = vmatmul.msk.f32.gmra.mxu1 %vm272_vm0, %v1568_v16 }
  0xe9   : > { %759 = vmatmul.f32.gmra.mxu2 %v639_v22 }
  0xec   : > { %v419_v25 = vpop.f32.mrf.mxu0 }
  0xed   : > { %v608_v27 = vadd.f32 %v1501_v46, %v419_v25 }
  0xef   : > { %v640_v29 = vmax.f32 %v608_v27, 0.0  ;;  %1178 = vmatmul.msk.f32.gmra.mxu0 %vm272_vm0, %v1590_v26  ;;  %v1704_v28 = vpop.f32.mrf.mxu1  ;;  %1209 = vmatmul.msk.f32.gmra.mxu1 %vm272_vm0, %v1576_v20 }
  0xf1   : > { %762 = vmatmul.f32.gmra.mxu2 %v640_v29 }
  0xf4   : > { %v422_v33 = vpop.f32.mrf.mxu0 }
  0xf5   : > { %v609_v35 = vadd.f32 %v1501_v46, %v422_v33 }
  0xf7   : > { %v641_v38 = vmax.f32 %v609_v35, 0.0  ;;  %1179 = vmatmul.msk.f32.gmra.mxu0 %vm272_vm0, %v1610_v34  ;;  %v1710_v35 = vpop.f32.mrf.mxu1  ;;  %1210 = vmatmul.msk.f32.gmra.mxu1 %vm272_vm0, %v1590_v26 }
  0xf9   : > { %765 = vmatmul.f32.gmra.mxu2 %v641_v38 }
  0xfc   : > { %v425_v42 = vpop.f32.mrf.mxu0 }
  0xfd   : > { %v610_v47 = vadd.f32 %v1501_v46, %v425_v42 }
  0xff   : > { %v642_v50 = vmax.f32 %v610_v47, 0.0  ;;  %1180 = vmatmul.msk.f32.gmra.mxu0 %vm272_vm0, %v1632_v43  ;;  %v1716_v42 = vpop.f32.mrf.mxu1  ;;  %1211 = vmatmul.msk.f32.gmra.mxu1 %vm272_vm0, %v1610_v34 }
 0x101   : > { %768 = vmatmul.f32.gmra.mxu2 %v642_v50 }
 0x104   : > { %v428_v55 = vpop.f32.mrf.mxu0 }
 0x105   : > { %v611_v58 = vadd.f32 %v1501_v46, %v428_v55 }
 0x107   : > { %v643_v61 = vmax.f32 %v611_v58, 0.0  ;;  %1181 = vmatmul.msk.f32.gmra.mxu0 %vm272_vm0, %v1654_v57  ;;  %v1722_v54 = vpop.f32.mrf.mxu1  ;;  %1212 = vmatmul.msk.f32.gmra.mxu1 %vm272_vm0, %v1632_v43 }
 0x109   : > { %771 = vmatmul.f32.gmra.mxu2 %v643_v61 }
 0x10c   : > { %v431_v63 = vpop.f32.mrf.mxu0 }
 0x10d   : > { %v612_v2 = vadd.f32 %v1501_v46, %v431_v63 }
 0x10f   : > { %v644_v5 = vmax.f32 %v612_v2, 0.0  ;;  %1182 = vmatmul.msk.f32.gmra.mxu0 %vm272_vm0, %v1670_v1  ;;  %v1728_v63 = vpop.f32.mrf.mxu1  ;;  %1213 = vmatmul.msk.f32.gmra.mxu1 %vm272_vm0, %v1654_v57 }
 0x111   : > { %774 = vmatmul.f32.gmra.mxu2 %v644_v5 }
 0x114   : > { %v434_v7 = vpop.f32.mrf.mxu0 }
 0x115   : > { %v613_v9 = vadd.f32 %v1501_v46, %v434_v7 }
 0x117   : > { %v645_v11 = vmax.f32 %v613_v9, 0.0  ;;  %729 = vmatmul.f32.vlgmr.msrb.gmra.mxu0 %v629_v52  ;;  %v1734_v9 = vpop.f32.mrf.mxu1  ;;  %1214 = vmatmul.msk.f32.gmra.mxu1 %vm272_vm0, %v1670_v1 }
 0x119   : > { %777 = vmatmul.f32.gmra.mxu2 %v645_v11 }
 0x11c   : > { %v437_v13 = vpop.f32.mrf.mxu0 }
 0x11d   : > { %v614_v14 = vadd.f32 %v1501_v46, %v437_v13 }
 0x11f   : > { %v646_v15 = vmax.f32 %v614_v14, 0.0 }
 0x121   : > { %780 = vmatmul.f32.gmra.mxu2 %v646_v15 }
 0x124   : > { %v440_v17 = vpop.f32.mrf.mxu0  ;;  %v733_v18 = vpop.f32.mrf.mxu2 }
 0x125   : > { %v615_v19 = vadd.f32 %v1501_v46, %v440_v17  ;;  %v734_v60 = vadd.f32 %v1692_v56, %v733_v18  ;;  %v1740_v18 = vpop.f32.mrf.mxu1 }
 0x127   : > { %v647_v22 = vmax.f32 %v615_v19, 0.0  ;;  %v827_v23 = vmax.f32 %v734_v60, 0.0 }
 0x129   : > { %783 = vmatmul.f32.gmra.mxu2 %v647_v22  ;;  %895 = vmatmul.f32.vlgmr.msra.gmra.mxu3 %v827_v23 }
 0x12c   : > { %v443_v24 = vpop.f32.mrf.mxu0  ;;  %v736_v25 = vpop.f32.mrf.mxu2 }
 0x12d   : > { %v616_v27 = vadd.f32 %v1501_v46, %v443_v24  ;;  %v737_v0 = vadd.f32 %v1692_v56, %v736_v25  ;;  %v1746_v25 = vpop.f32.mrf.mxu1 }
 0x12f   : > { %v648_v29 = vmax.f32 %v616_v27, 0.0  ;;  %v828_v30 = vmax.f32 %v737_v0, 0.0 }
 0x131   : > { %786 = vmatmul.f32.gmra.mxu2 %v648_v29  ;;  %898 = vmatmul.f32.gmra.mxu3 %v828_v30 }
 0x134   : > { %v446_v31 = vpop.f32.mrf.mxu0  ;;  %v739_v32 = vpop.f32.mrf.mxu2 }
 0x135   : > { %v617_v33 = vadd.f32 %v1501_v46, %v446_v31  ;;  %v740_v4 = vadd.f32 %v1692_v56, %v739_v32  ;;  %v1752_v32 = vpop.f32.mrf.mxu1 }
 0x137   : > { %v649_v36 = vmax.f32 %v617_v33, 0.0  ;;  %v829_v38 = vmax.f32 %v740_v4, 0.0 }
 0x139   : > { %789 = vmatmul.f32.gmra.mxu2 %v649_v36  ;;  %901 = vmatmul.f32.gmra.mxu3 %v829_v38 }
 0x13c   : > { %v449_v39 = vpop.f32.mrf.mxu0  ;;  %v742_v40 = vpop.f32.mrf.mxu2 }
 0x13d   : > { %v618_v41 = vadd.f32 %v1501_v46, %v449_v39  ;;  %v743_v8 = vadd.f32 %v1692_v56, %v742_v40  ;;  %v1758_v40 = vpop.f32.mrf.mxu1 }
 0x13f   : > { %v650_v47 = vmax.f32 %v618_v41, 0.0  ;;  %v830_v45 = vmax.f32 %v743_v8, 0.0 }
 0x141   : > { %792 = vmatmul.f32.gmra.mxu2 %v650_v47  ;;  %904 = vmatmul.f32.gmra.mxu3 %v830_v45 }
 0x144   : > { %v452_v50 = vpop.f32.mrf.mxu0  ;;  %v745_v51 = vpop.f32.mrf.mxu2 }
 0x145   : > { %v619_v53 = vadd.f32 %v1501_v46, %v452_v50  ;;  %v746_v12 = vadd.f32 %v1692_v56, %v745_v51 }
 0x147   : > { %v651_v55 = vmax.f32 %v619_v53, 0.0  ;;  %v831_v58 = vmax.f32 %v746_v12, 0.0  ;;  %v1762_v12 = vpop.f32.mrf.mxu1 }
 0x149   : > { %795 = vmatmul.f32.gmra.mxu2 %v651_v55  ;;  %907 = vmatmul.f32.gmra.mxu3 %v831_v58 }
 0x14c   : > { %v455_v48 = vpop.f32.mrf.mxu0  ;;  %v748_v61 = vpop.f32.mrf.mxu2 }
 0x14d   : > { %v620_v62 = vadd.f32 %v1501_v46, %v455_v48  ;;  %v749_v16 = vadd.f32 %v1692_v56, %v748_v61 }
 0x14f   : > { %v652_v2 = vmax.f32 %v620_v62, 0.0  ;;  %v832_v5 = vmax.f32 %v749_v16, 0.0 }
 0x151   : > { %798 = vmatmul.f32.gmra.mxu2 %v652_v2  ;;  %910 = vmatmul.f32.gmra.mxu3 %v832_v5  ;;  %v1766_v2 = vpop.f32.mrf.mxu1 }
 0x154   : > { %v458_v6 = vpop.f32.mrf.mxu0  ;;  %v751_v7 = vpop.f32.mrf.mxu2 }
 0x155   : > { %v621_v52 = vadd.f32 %v1501_v46, %v458_v6  ;;  %v752_v20 = vadd.f32 %v1692_v56, %v751_v7 }
 0x157   : > { %v653_v11 = vmax.f32 %v621_v52, 0.0  ;;  %v833_v13 = vmax.f32 %v752_v20, 0.0 }
 0x159   : > { %801 = vmatmul.f32.gmra.mxu2 %v653_v11  ;;  %913 = vmatmul.f32.gmra.mxu3 %v833_v13  ;;  %v1770_v13 = vpop.f32.mrf.mxu1 }
 0x15c   : > { %v461_v14 = vpop.f32.mrf.mxu0  ;;  %v754_v15 = vpop.f32.mrf.mxu2 }
 0x15d   : > { %v622_v17 = vadd.f32 %v1501_v46, %v461_v14  ;;  %v755_v26 = vadd.f32 %v1692_v56, %v754_v15 }
 0x15f   : > { %v654_v19 = vmax.f32 %v622_v17, 0.0  ;;  %v834_v60 = vmax.f32 %v755_v26, 0.0 }
 0x161   : > { %804 = vmatmul.f32.gmra.mxu2 %v654_v19  ;;  %916 = vmatmul.f32.gmra.mxu3 %v834_v60 }
 0x164   : > { %v464_v22 = vpop.f32.mrf.mxu0  ;;  %v757_v23 = vpop.f32.mrf.mxu2 }
 0x165   : > { %v623_v24 = vadd.f32 %v1501_v46, %v464_v22  ;;  %v758_v34 = vadd.f32 %v1692_v56, %v757_v23  ;;  %v1775_v23 = vpop.f32.mrf.mxu1 }
 0x167   : > { %v655_v27 = vmax.f32 %v623_v24, 0.0  ;;  %v835_v0 = vmax.f32 %v758_v34, 0.0 }
 0x169   : > { %807 = vmatmul.f32.gmra.mxu2 %v655_v27  ;;  %919 = vmatmul.f32.gmra.mxu3 %v835_v0 }
 0x16c   : > { %v467_v29 = vpop.f32.mrf.mxu0  ;;  %v760_v30 = vpop.f32.mrf.mxu2 }
 0x16d   : > { %v624_v31 = vadd.f32 %v1501_v46, %v467_v29  ;;  %v761_v43 = vadd.f32 %v1692_v56, %v760_v30  ;;  %v1778_v29 = vpop.f32.mrf.mxu1  ;;  %v1783_v30 = vld [vmem:[%s1996_s2 + $0x3] ss:$0 sm:$0xff] }
 0x16f   : > { %v656_v33 = vmax.f32 %v624_v31, 0.0  ;;  %v836_v4 = vmax.f32 %v761_v43, 0.0 }
 0x171   : > { %810 = vmatmul.f32.gmra.mxu2 %v656_v33  ;;  %922 = vmatmul.f32.gmra.mxu3 %v836_v4  ;;  %v1788_v33 = vld [vmem:[%s1996_s2 + $0x1] ss:$0 sm:$0xff] }
 0x174   : > { %v470_v36 = vpop.f32.mrf.mxu0  ;;  %v763_v38 = vpop.f32.mrf.mxu2 }
 0x175   : > { %v625_v39 = vadd.f32 %v1501_v46, %v470_v36  ;;  %v764_v57 = vadd.f32 %v1692_v56, %v763_v38  ;;  %v664_v38 = vadd.f32 %v1788_v33, %v1638_v49 }
 0x177   : > { %v657_v41 = vmax.f32 %v625_v39, 0.0  ;;  %v837_v8 = vmax.f32 %v764_v57, 0.0 }
 0x179   : > { %813 = vmatmul.f32.gmra.mxu2 %v657_v41  ;;  %925 = vmatmul.f32.gmra.mxu3 %v837_v8  ;;  %v1801_v8 = vpop.f32.mrf.mxu1 }
 0x17c   : > { %v473_v47 = vpop.f32.mrf.mxu0  ;;  %v766_v45 = vpop.f32.mrf.mxu2 }
 0x17d   : > { %v626_v50 = vadd.f32 %v1501_v46, %v473_v47  ;;  %v767_v51 = vadd.f32 %v1692_v56, %v766_v45 }
 0x17f   : > { %v658_v53 = vmax.f32 %v626_v50, 0.0  ;;  %v838_v1 = vmax.f32 %v767_v51, 0.0  ;;  %v665_v51 = vadd.f32 %v1788_v33, %v1660_v59 }
 0x181   : > { %816 = vmatmul.f32.gmra.mxu2 %v658_v53  ;;  %928 = vmatmul.f32.gmra.mxu3 %v838_v1 }
 0x184   : > { %v476_v55 = vpop.f32.mrf.mxu0  ;;  %v769_v58 = vpop.f32.mrf.mxu2 }
 0x185   : > { %v627_v48 = vadd.f32 %v1501_v46, %v476_v55  ;;  %v770_v61 = vadd.f32 %v1692_v56, %v769_v58  ;;  %v1811_v58 = vpop.f32.mrf.mxu1 }
 0x187   : > { %v659_v62 = vmax.f32 %v627_v48, 0.0  ;;  %v839_v16 = vmax.f32 %v770_v61, 0.0 }
 0x189   : > { %819 = vmatmul.f32.gmra.mxu2 %v659_v62  ;;  %931 = vmatmul.f32.gmra.mxu3 %v839_v16 }
 0x18c   : > { %v479_v5 = vpop.f32.mrf.mxu0  ;;  %v772_v6 = vpop.f32.mrf.mxu2 }
 0x18d   : > { %v628_v7 = vadd.f32 %v1501_v46, %v479_v5  ;;  %v773_v52 = vadd.f32 %v1692_v56, %v772_v6  ;;  %v666_v5 = vadd.f32 %v1788_v33, %v1673_v3 }
 0x18f   : > { %v660_v20 = vmax.f32 %v628_v7, 0.0  ;;  %v840_v11 = vmax.f32 %v773_v52, 0.0 }
 0x191   : > { %822 = vmatmul.f32.gmra.mxu2 %v660_v20  ;;  %934 = vmatmul.f32.gmra.mxu3 %v840_v11 }
 0x194   : > { %v730_v14 = vpop.f32.mrf.mxu0  ;;  %v775_v15 = vpop.f32.mrf.mxu2 }
 0x195   : > { %v731_v17 = vadd.f32 %v1692_v56, %v730_v14  ;;  %v776_v26 = vadd.f32 %v1692_v56, %v775_v15  ;;  %v1821_v15 = vpop.f32.mrf.mxu1 }
 0x197   : > { %v826_v19 = vmax.f32 %v731_v17, 0.0  ;;  %v841_v60 = vmax.f32 %v776_v26, 0.0  ;;  %v667_v17 = vadd.f32 %v1788_v33, %v1682_v10 }
 0x199   : > { %892 = vmatmul.f32.vlgmr.msrb.gmra.mxu1 %v826_v19  ;;  %937 = vmatmul.f32.gmra.mxu3 %v841_v60 }
 0x19c   : > { %v778_v22 = vpop.f32.mrf.mxu2 }
 0x19d   : > { %v779_v46 = vadd.f32 %v1692_v56, %v778_v22  ;;  %v1831_v10 = vpop.f32.mrf.mxu1 }
 0x19f   : > { %v842_v24 = vmax.f32 %v779_v46, 0.0 }
 0x1a1   : > { %940 = vmatmul.f32.gmra.mxu3 %v842_v24 }
 0x1a4   : > { %v781_v34 = vpop.f32.mrf.mxu2 }
 0x1a5   : > { %v782_v27 = vadd.f32 %v1692_v56, %v781_v34  ;;  %v668_v34 = vadd.f32 %v1788_v33, %v1687_v44 }
 0x1a7   : > { %v843_v0 = vmax.f32 %v782_v27, 0.0 }
 0x1a9   : > { %943 = vmatmul.f32.gmra.mxu3 %v843_v0 }
 0x1ac   : > { %v784_v31 = vpop.f32.mrf.mxu2  ;;  %v896_v43 = vpop.f32.mrf.mxu3 }
 0x1ad   : > { %v785_v4 = vadd.f32 %v1692_v56, %v784_v31  ;;  %v897_v36 = vadd.f32 %v1783_v30, %v896_v43 }
 0x1af   : > { %v844_v39 = vmax.f32 %v785_v4, 0.0  ;;  %v990_v57 = vmax.f32 %v897_v36, 0.0 }
 0x1b1   : > { %v1022_v41 = vadd.f32 %v990_v57, %v664_v38  ;;  %946 = vmatmul.f32.gmra.mxu3 %v844_v39  ;;  %v669_v39 = vadd.f32 %v1788_v33, %v1698_v21 }
 0x1b3   : > { %1055 = vst.msk [vmem:[%s1799_s13 + $0x8] sm:$0xff] %vm1053_vm1, %v1022_v41 }
 0x1b4   : > { %v787_v47 = vpop.f32.mrf.mxu2  ;;  %v899_v45 = vpop.f32.mrf.mxu3 }
 0x1b5   : > { %v788_v49 = vadd.f32 %v1692_v56, %v787_v47  ;;  %v900_v50 = vadd.f32 %v1783_v30, %v899_v45  ;;  %v1839_v47 = vpop.f32.mrf.mxu1 }
 0x1b7   : > { %v845_v53 = vmax.f32 %v788_v49, 0.0  ;;  %v991_v1 = vmax.f32 %v900_v50, 0.0 }
 0x1b9   : > { %v1023_v55 = vadd.f32 %v991_v1, %v665_v51  ;;  %949 = vmatmul.f32.gmra.mxu3 %v845_v53  ;;  %v670_v53 = vadd.f32 %v1788_v33, %v1704_v28 }
 0x1bb   : > { %1056 = vst.msk [vmem:[%s1799_s13 + $0x10] sm:$0xff] %vm1053_vm1, %v1023_v55 }
 0x1bc   : > { %v790_v48 = vpop.f32.mrf.mxu2  ;;  %v902_v61 = vpop.f32.mrf.mxu3 }
 0x1bd   : > { %v791_v62 = vadd.f32 %v1692_v56, %v790_v48  ;;  %v903_v16 = vadd.f32 %v1783_v30, %v902_v61  ;;  %v1849_v48 = vpop.f32.mrf.mxu1 }
 0x1bf   : > { %v846_v59 = vmax.f32 %v791_v62, 0.0  ;;  %v992_v6 = vmax.f32 %v903_v16, 0.0 }
 0x1c1   : > { %v1024_v7 = vadd.f32 %v992_v6, %v666_v5  ;;  %952 = vmatmul.f32.gmra.mxu3 %v846_v59  ;;  %v671_v59 = vadd.f32 %v1788_v33, %v1710_v35 }
 0x1c3   : > { %1057 = vst.msk [vmem:[%s1799_s13 + $0x18] sm:$0xff] %vm1053_vm1, %v1024_v7 }
 0x1c4   : > { %v793_v52 = vpop.f32.mrf.mxu2  ;;  %v905_v20 = vpop.f32.mrf.mxu3 }
 0x1c5   : > { %v794_v11 = vadd.f32 %v1692_v56, %v793_v52  ;;  %v906_v14 = vadd.f32 %v1783_v30, %v905_v20 }
 0x1c7   : > { %v847_v3 = vmax.f32 %v794_v11, 0.0  ;;  %v993_v26 = vmax.f32 %v906_v14, 0.0 }
 0x1c9   : > { %v1025_v19 = vadd.f32 %v993_v26, %v667_v17  ;;  %955 = vmatmul.f32.gmra.mxu3 %v847_v3  ;;  %v1859_v17 = vpop.f32.mrf.mxu1  ;;  %v672_v3 = vadd.f32 %v1788_v33, %v1716_v42 }
 0x1cb   : > { %1058 = vst.msk [vmem:[%s1799_s13 + $0x20] sm:$0xff] %vm1053_vm1, %v1025_v19 }
 0x1cc   : > { %v796_v60 = vpop.f32.mrf.mxu2  ;;  %v908_v22 = vpop.f32.mrf.mxu3 }
 0x1cd   : > { %v797_v46 = vadd.f32 %v1692_v56, %v796_v60  ;;  %v909_v24 = vadd.f32 %v1783_v30, %v908_v22 }
 0x1cf   : > { %v848_v27 = vmax.f32 %v797_v46, 0.0  ;;  %v994_v0 = vmax.f32 %v909_v24, 0.0 }
 0x1d1   : > { %v1026_v31 = vadd.f32 %v994_v0, %v668_v34  ;;  %958 = vmatmul.f32.gmra.mxu3 %v848_v27  ;;  %v673_v34 = vadd.f32 %v1788_v33, %v1722_v54  ;;  %v1869_v42 = vpop.f32.mrf.mxu1 }
 0x1d3   : > { %1059 = vst.msk [vmem:[%s1799_s13 + $0x28] sm:$0xff] %vm1053_vm1, %v1026_v31 }
 0x1d4   : > { %v799_v43 = vpop.f32.mrf.mxu2  ;;  %v911_v4 = vpop.f32.mrf.mxu3 }
 0x1d5   : > { %v800_v36 = vadd.f32 %v1692_v56, %v799_v43  ;;  %v912_v38 = vadd.f32 %v1783_v30, %v911_v4 }
 0x1d7   : > { %v849_v44 = vmax.f32 %v800_v36, 0.0  ;;  %v995_v57 = vmax.f32 %v912_v38, 0.0 }
 0x1d9   : > { %v1027_v41 = vadd.f32 %v995_v57, %v669_v39  ;;  %961 = vmatmul.f32.gmra.mxu3 %v849_v44  ;;  %v674_v39 = vadd.f32 %v1788_v33, %v1728_v63 }
 0x1db   : > { %1060 = vst.msk [vmem:[%s1799_s13 + $0x30] sm:$0xff] %vm1053_vm1, %v1027_v41  ;;  %v1877_v41 = vpop.f32.mrf.mxu1 }
 0x1dc   : > { %v802_v45 = vpop.f32.mrf.mxu2  ;;  %v914_v49 = vpop.f32.mrf.mxu3 }
 0x1dd   : > { %v803_v50 = vadd.f32 %v1692_v56, %v802_v45  ;;  %v915_v51 = vadd.f32 %v1783_v30, %v914_v49 }
 0x1df   : > { %v850_v21 = vmax.f32 %v803_v50, 0.0  ;;  %v996_v1 = vmax.f32 %v915_v51, 0.0 }
 0x1e1   : > { %v1028_v55 = vadd.f32 %v996_v1, %v670_v53  ;;  %964 = vmatmul.f32.gmra.mxu3 %v850_v21  ;;  %v675_v53 = vadd.f32 %v1788_v33, %v1734_v9 }
 0x1e3   : > { %1061 = vst.msk [vmem:[%s1799_s13 + $0x38] sm:$0xff] %vm1053_vm1, %v1028_v55  ;;  %v1887_v55 = vpop.f32.mrf.mxu1 }
 0x1e4   : > { %v805_v61 = vpop.f32.mrf.mxu2  ;;  %v917_v62 = vpop.f32.mrf.mxu3 }
 0x1e5   : > { %v806_v16 = vadd.f32 %v1692_v56, %v805_v61  ;;  %v918_v5 = vadd.f32 %v1783_v30, %v917_v62 }
 0x1e7   : > { %v851_v28 = vmax.f32 %v806_v16, 0.0  ;;  %v997_v6 = vmax.f32 %v918_v5, 0.0 }
 0x1e9   : > { %v1029_v7 = vadd.f32 %v997_v6, %v671_v59  ;;  %967 = vmatmul.f32.gmra.mxu3 %v851_v28  ;;  %v676_v59 = vadd.f32 %v1788_v33, %v1740_v18 }
 0x1eb   : > { %1062 = vst.msk [vmem:[%s1799_s13 + $0x40] sm:$0xff] %vm1053_vm1, %v1029_v7 }
 0x1ec   : > { %v808_v52 = vpop.f32.mrf.mxu2  ;;  %v920_v20 = vpop.f32.mrf.mxu3 }
 0x1ed   : > { %v809_v11 = vadd.f32 %v1692_v56, %v808_v52  ;;  %v921_v14 = vadd.f32 %v1783_v30, %v920_v20 }
 0x1ef   : > { %v852_v35 = vmax.f32 %v809_v11, 0.0  ;;  %v998_v26 = vmax.f32 %v921_v14, 0.0 }
 0x1f1   : > { %v1030_v19 = vadd.f32 %v998_v26, %v672_v3  ;;  %970 = vmatmul.f32.gmra.mxu3 %v852_v35  ;;  %v677_v3 = vadd.f32 %v1788_v33, %v1746_v25 }
 0x1f3   : > { %1063 = vst.msk [vmem:[%s1799_s13 + $0x48] sm:$0xff] %vm1053_vm1, %v1030_v19  ;;  %v663_v19 = vadd.f32 %v1788_v33, %v1616_v37 }
 0x1f4   : > { %v811_v60 = vpop.f32.mrf.mxu2  ;;  %v923_v22 = vpop.f32.mrf.mxu3 }
 0x1f5   : > { %v812_v46 = vadd.f32 %v1692_v56, %v811_v60  ;;  %v924_v24 = vadd.f32 %v1783_v30, %v923_v22 }
 0x1f7   : > { %v853_v27 = vmax.f32 %v812_v46, 0.0  ;;  %v999_v0 = vmax.f32 %v924_v24, 0.0  ;;  %v678_v24 = vadd.f32 %v1788_v33, %v1752_v32  ;;  %v680_v32 = vadd.f32 %v1788_v33, %v1762_v12 }
 0x1f8   : > { %v682_v12 = vadd.f32 %v1788_v33, %v1770_v13  ;;  %v684_v13 = vadd.f32 %v1788_v33, %v1778_v29  ;;  %v686_v29 = vadd.f32 %v1788_v33, %v1811_v58  ;;  %v688_v58 = vadd.f32 %v1788_v33, %v1831_v10 }
 0x1f9   : > { %v1031_v31 = vadd.f32 %v999_v0, %v673_v34  ;;  %973 = vmatmul.f32.gmra.mxu3 %v853_v27  ;;  %v690_v10 = vadd.f32 %v1788_v33, %v1849_v48  ;;  %v692_v48 = vadd.f32 %v1788_v33, %v1869_v42  ;;  %v694_v42 = vadd.f32 %v1788_v33, %v1887_v55 }
 0x1fb   : > { %1064 = vst.msk [vmem:[%s1799_s13 + $0x50] sm:$0xff] %vm1053_vm1, %v1031_v31  ;;  %v679_v31 = vadd.f32 %v1788_v33, %v1758_v40  ;;  %v681_v40 = vadd.f32 %v1788_v33, %v1766_v2  ;;  %v683_v2 = vadd.f32 %v1788_v33, %v1775_v23  ;;  %v685_v23 = vadd.f32 %v1788_v33, %v1801_v8 }
 0x1fc   : > { %v814_v43 = vpop.f32.mrf.mxu2  ;;  %v926_v4 = vpop.f32.mrf.mxu3  ;;  %v687_v8 = vadd.f32 %v1788_v33, %v1821_v15  ;;  %v689_v15 = vadd.f32 %v1788_v33, %v1839_v47  ;;  %v691_v47 = vadd.f32 %v1788_v33, %v1859_v17  ;;  %v693_v17 = vadd.f32 %v1788_v33, %v1877_v41 }
 0x1fd   : > { %v815_v36 = vadd.f32 %v1692_v56, %v814_v43  ;;  %v927_v38 = vadd.f32 %v1783_v30, %v926_v4 }
 0x1ff   : > { %v854_v54 = vmax.f32 %v815_v36, 0.0  ;;  %v1000_v44 = vmax.f32 %v927_v38, 0.0 }
 0x201   : > { %v1032_v57 = vadd.f32 %v1000_v44, %v674_v39  ;;  %976 = vmatmul.f32.gmra.mxu3 %v854_v54 }
 0x203   : > { %1065 = vst.msk [vmem:[%s1799_s13 + $0x58] sm:$0xff] %vm1053_vm1, %v1032_v57 }
 0x204   : > { %v817_v45 = vpop.f32.mrf.mxu2  ;;  %v929_v49 = vpop.f32.mrf.mxu3 }
 0x205   : > { %v818_v50 = vadd.f32 %v1692_v56, %v817_v45  ;;  %v930_v51 = vadd.f32 %v1783_v30, %v929_v49 }
 0x207   : > { %v855_v63 = vmax.f32 %v818_v50, 0.0  ;;  %v1001_v21 = vmax.f32 %v930_v51, 0.0 }
 0x209   : > { %v1033_v1 = vadd.f32 %v1001_v21, %v675_v53  ;;  %979 = vmatmul.f32.gmra.mxu3 %v855_v63 }
 0x20b   : > { %1066 = vst.msk [vmem:[%s1799_s13 + $0x60] sm:$0xff] %vm1053_vm1, %v1033_v1 }
 0x20c   : > { %v820_v61 = vpop.f32.mrf.mxu2  ;;  %v932_v62 = vpop.f32.mrf.mxu3 }
 0x20d   : > { %v821_v16 = vadd.f32 %v1692_v56, %v820_v61  ;;  %v933_v5 = vadd.f32 %v1783_v30, %v932_v62 }
 0x20f   : > { %v856_v28 = vmax.f32 %v821_v16, 0.0  ;;  %v1002_v9 = vmax.f32 %v933_v5, 0.0 }
 0x211   : > { %v1034_v6 = vadd.f32 %v1002_v9, %v676_v59  ;;  %982 = vmatmul.f32.gmra.mxu3 %v856_v28 }
 0x213   : > { %1067 = vst.msk [vmem:[%s1799_s13 + $0x68] sm:$0xff] %vm1053_vm1, %v1034_v6 }
 0x214   : > { %v823_v7 = vpop.f32.mrf.mxu2  ;;  %v935_v52 = vpop.f32.mrf.mxu3 }
 0x215   : > { %v824_v20 = vadd.f32 %v1692_v56, %v823_v7  ;;  %v936_v11 = vadd.f32 %v1783_v30, %v935_v52 }
 0x216   : > { %v893_v14 = vpop.f32.mrf.mxu1 }
 0x217   : > { %v857_v18 = vmax.f32 %v824_v20, 0.0  ;;  %v1003_v35 = vmax.f32 %v936_v11, 0.0  ;;  %v894_v26 = vadd.f32 %v1783_v30, %v893_v14 }
 0x219   : > { %v1035_v60 = vadd.f32 %v1003_v35, %v677_v3  ;;  %v989_v22 = vmax.f32 %v894_v26, 0.0  ;;  %985 = vmatmul.f32.gmra.mxu3 %v857_v18 }
 0x21b   : > { %1068 = vst.msk [vmem:[%s1799_s13 + $0x70] sm:$0xff] %vm1053_vm1, %v1035_v60  ;;  %v1021_v56 = vadd.f32 %v989_v22, %v663_v19 }
 0x21c   : > { %v938_v46 = vpop.f32.mrf.mxu3 }
 0x21d   : > { %1054 = vst.msk [vmem:[%s1799_s13] sm:$0xff] %vm1053_vm1, %v1021_v56  ;;  %v939_v25 = vadd.f32 %v1783_v30, %v938_v46 }
 0x21f   : > { %v1004_v34 = vmax.f32 %v939_v25, 0.0 }
 0x221   : > { %v1036_v27 = vadd.f32 %v1004_v34, %v678_v24 }
 0x223   : > { %1069 = vst.msk [vmem:[%s1799_s13 + $0x78] sm:$0xff] %vm1053_vm1, %v1036_v27 }
 0x224   : > { %v941_v37 = vpop.f32.mrf.mxu3 }
 0x225   : > { %v942_v0 = vadd.f32 %v1783_v30, %v941_v37 }
 0x227   : > { %v1005_v43 = vmax.f32 %v942_v0, 0.0 }
 0x229   : > { %v1037_v4 = vadd.f32 %v1005_v43, %v679_v31 }
 0x22b   : > { %1070 = vst.msk [vmem:[%s1799_s13 + $0x80] sm:$0xff] %vm1053_vm1, %v1037_v4 }
 0x22c   : > { %v944_v36 = vpop.f32.mrf.mxu3 }
 0x22d   : > { %v945_v38 = vadd.f32 %v1783_v30, %v944_v36 }
 0x22f   : > { %v1006_v39 = vmax.f32 %v945_v38, 0.0 }
 0x231   : > { %v1038_v54 = vadd.f32 %v1006_v39, %v680_v32 }
 0x233   : > { %1071 = vst.msk [vmem:[%s1799_s13 + $0x88] sm:$0xff] %vm1053_vm1, %v1038_v54 }
 0x234   : > { %v947_v44 = vpop.f32.mrf.mxu3 }
 0x235   : > { %v948_v57 = vadd.f32 %v1783_v30, %v947_v44 }
 0x237   : > { %v1007_v45 = vmax.f32 %v948_v57, 0.0 }
 0x239   : > { %v1039_v49 = vadd.f32 %v1007_v45, %v681_v40 }
 0x23b   : > { %1072 = vst.msk [vmem:[%s1799_s13 + $0x90] sm:$0xff] %vm1053_vm1, %v1039_v49 }
 0x23c   : > { %v950_v50 = vpop.f32.mrf.mxu3 }
 0x23d   : > { %v951_v51 = vadd.f32 %v1783_v30, %v950_v50 }
 0x23f   : > { %v1008_v53 = vmax.f32 %v951_v51, 0.0 }
 0x241   : > { %v1040_v63 = vadd.f32 %v1008_v53, %v682_v12 }
 0x243   : > { %1073 = vst.msk [vmem:[%s1799_s13 + $0x98] sm:$0xff] %vm1053_vm1, %v1040_v63 }
 0x244   : > { %v953_v21 = vpop.f32.mrf.mxu3 }
 0x245   : > { %v954_v1 = vadd.f32 %v1783_v30, %v953_v21 }
 0x247   : > { %v1009_v61 = vmax.f32 %v954_v1, 0.0 }
 0x249   : > { %v1041_v62 = vadd.f32 %v1009_v61, %v683_v2 }
 0x24b   : > { %1074 = vst.msk [vmem:[%s1799_s13 + $0xa0] sm:$0xff] %vm1053_vm1, %v1041_v62 }
 0x24c   : > { %v956_v16 = vpop.f32.mrf.mxu3 }
 0x24d   : > { %v957_v5 = vadd.f32 %v1783_v30, %v956_v16 }
 0x24f   : > { %v1010_v59 = vmax.f32 %v957_v5, 0.0 }
 0x251   : > { %v1042_v28 = vadd.f32 %v1010_v59, %v684_v13 }
 0x253   : > { %1075 = vst.msk [vmem:[%s1799_s13 + $0xa8] sm:$0xff] %vm1053_vm1, %v1042_v28 }
 0x254   : > { %v959_v9 = vpop.f32.mrf.mxu3 }
 0x255   : > { %v960_v6 = vadd.f32 %v1783_v30, %v959_v9 }
 0x257   : > { %v1011_v7 = vmax.f32 %v960_v6, 0.0 }
 0x259   : > { %v1043_v52 = vadd.f32 %v1011_v7, %v685_v23 }
 0x25b   : > { %1076 = vst.msk [vmem:[%s1799_s13 + $0xb0] sm:$0xff] %vm1053_vm1, %v1043_v52 }
 0x25c   : > { %v962_v20 = vpop.f32.mrf.mxu3 }
 0x25d   : > { %v963_v11 = vadd.f32 %v1783_v30, %v962_v20 }
 0x25f   : > { %v1012_v14 = vmax.f32 %v963_v11, 0.0 }
 0x261   : > { %v1044_v3 = vadd.f32 %v1012_v14, %v686_v29 }
 0x263   : > { %1077 = vst.msk [vmem:[%s1799_s13 + $0xb8] sm:$0xff] %vm1053_vm1, %v1044_v3 }
 0x264   : > { %v965_v18 = vpop.f32.mrf.mxu3 }
 0x265   : > { %v966_v35 = vadd.f32 %v1783_v30, %v965_v18 }
 0x267   : > { %v1013_v26 = vmax.f32 %v966_v35, 0.0 }
 0x269   : > { %v1045_v19 = vadd.f32 %v1013_v26, %v687_v8 }
 0x26b   : > { %1078 = vst.msk [vmem:[%s1799_s13 + $0xc0] sm:$0xff] %vm1053_vm1, %v1045_v19 }
 0x26c   : > { %v968_v60 = vpop.f32.mrf.mxu3 }
 0x26d   : > { %v969_v22 = vadd.f32 %v1783_v30, %v968_v60 }
 0x26f   : > { %v1014_v56 = vmax.f32 %v969_v22, 0.0 }
 0x271   : > { %v1046_v46 = vadd.f32 %v1014_v56, %v688_v58 }
 0x273   : > { %1079 = vst.msk [vmem:[%s1799_s13 + $0xc8] sm:$0xff] %vm1053_vm1, %v1046_v46 }
 0x274   : > { %v971_v25 = vpop.f32.mrf.mxu3 }
 0x275   : > { %v972_v24 = vadd.f32 %v1783_v30, %v971_v25 }
 0x277   : > { %v1015_v34 = vmax.f32 %v972_v24, 0.0 }
 0x279   : > { %v1047_v27 = vadd.f32 %v1015_v34, %v689_v15 }
 0x27b   : > { %1080 = vst.msk [vmem:[%s1799_s13 + $0xd0] sm:$0xff] %vm1053_vm1, %v1047_v27 }
 0x27c   : > { %v974_v37 = vpop.f32.mrf.mxu3 }
 0x27d   : > { %v975_v0 = vadd.f32 %v1783_v30, %v974_v37 }
 0x27f   : > { %v1016_v31 = vmax.f32 %v975_v0, 0.0 }
 0x281   : > { %v1048_v43 = vadd.f32 %v1016_v31, %v690_v10 }
 0x283   : > { %1081 = vst.msk [vmem:[%s1799_s13 + $0xd8] sm:$0xff] %vm1053_vm1, %v1048_v43 }
 0x284   : > { %v977_v4 = vpop.f32.mrf.mxu3 }
 0x285   : > { %v978_v36 = vadd.f32 %v1783_v30, %v977_v4 }
 0x287   : > { %v1017_v38 = vmax.f32 %v978_v36, 0.0 }
 0x289   : > { %v1049_v32 = vadd.f32 %v1017_v38, %v691_v47 }
 0x28b   : > { %1082 = vst.msk [vmem:[%s1799_s13 + $0xe0] sm:$0xff] %vm1053_vm1, %v1049_v32 }
 0x28c   : > { %v980_v39 = vpop.f32.mrf.mxu3 }
 0x28d   : > { %v981_v54 = vadd.f32 %v1783_v30, %v980_v39 }
 0x28f   : > { %v1018_v44 = vmax.f32 %v981_v54, 0.0 }
 0x291   : > { %v1050_v57 = vadd.f32 %v1018_v44, %v692_v48 }
 0x293   : > { %1083 = vst.msk [vmem:[%s1799_s13 + $0xe8] sm:$0xff] %vm1053_vm1, %v1050_v57 }
 0x294   : > { %v983_v40 = vpop.f32.mrf.mxu3 }
 0x295   : > { %v984_v45 = vadd.f32 %v1783_v30, %v983_v40 }
 0x297   : > { %v1019_v49 = vmax.f32 %v984_v45, 0.0 }
 0x299   : > { %v1051_v50 = vadd.f32 %v1019_v49, %v693_v17 }
 0x29b   : > { %1084 = vst.msk [vmem:[%s1799_s13 + $0xf0] sm:$0xff] %vm1053_vm1, %v1051_v50 }
 0x29c   : > { %v986_v51 = vpop.f32.mrf.mxu3 }
 0x29d   : > { %v987_v12 = vadd.f32 %v1783_v30, %v986_v51 }
 0x29f   : > { %v1020_v53 = vmax.f32 %v987_v12, 0.0 }
 0x2a1   : > { %v1052_v63 = vadd.f32 %v1020_v53, %v694_v42 }
 0x2a3   : > { %1085 = vst.msk [vmem:[%s1799_s13 + $0xf8] sm:$0xff] %vm1053_vm1, %v1052_v63 }
 0x2a4 PF: > { %s15_s18 = sadd.s32 1, %s1267_s18  }
 0x2a5   : > { %p12_p4 = scmp.ge.s32.totalorder %s15_s18, 4  }
 0x2a7   :  { %14 = sbr.rel (!%p12_p4) target bundleno = 1 (0x1), region = 70 }

</bundles_post_ra>
